<compile_context>
chip_gen: v7x
topology: tpu7x:2x2x1
jax: 0.10.0
libtpu: 0.0.40
codegen_flags: <defaults>
</compile_context>

<pallas_src>
import jax
import jax.numpy as jnp
from jax.experimental import pallas as pl
from jax.experimental.pallas import tpu as pltpu

_LANES = 128
_ROWS_PER_BLOCK = 2048  # multiple of 128; ~1 MiB lane-padded input tile


def _vdn_sum_kernel(q_ref, out_ref):
    # q_ref:   (Rblk, 128, A) VMEM tile  (rows presented lane-dense as (., 128))
    # out_ref: (Rblk, 128)    VMEM tile  (lane-dense row sums)
    s = jnp.sum(q_ref[...].astype(jnp.float32), axis=-1)  # XLU reduce (free slot)
    out_ref[...] = s.astype(out_ref.dtype)


def vdn_mixer_forward(agent_qs: jax.Array) -> jax.Array:
    """Pallas implementation of VDNMixer.forward: sum over dim=2, keepdim=True."""
    B, T, A = agent_qs.shape
    N = B * T

    # Pad the row count so (a) rows can be viewed lane-dense as (., 128) and
    # (b) the row block divides the padded row count exactly. Padding rows are
    # zeros, and their sums are sliced off before returning.
    n_pad = pl.cdiv(N, _LANES) * _LANES
    rows_per_block = min(_ROWS_PER_BLOCK, n_pad)
    n_pad = pl.cdiv(n_pad, rows_per_block) * rows_per_block
    r_blk = rows_per_block // _LANES           # sublane-row-blocks per tile
    n_row_blocks = n_pad // _LANES
    grid = (n_pad // rows_per_block,)

    q = agent_qs.reshape(N, A)
    if n_pad != N:
        q = jnp.pad(q, ((0, n_pad - N), (0, 0)))
    q3 = q.reshape(n_row_blocks, _LANES, A)    # free reshape, same HBM layout

    out = pl.pallas_call(
        _vdn_sum_kernel,
        out_shape=jax.ShapeDtypeStruct((n_row_blocks, _LANES), agent_qs.dtype),
        grid_spec=pl.GridSpec(
            grid=grid,
            in_specs=[pl.BlockSpec((r_blk, _LANES, A), lambda i: (i, 0, 0))],
            out_specs=pl.BlockSpec((r_blk, _LANES), lambda i: (i, 0)),
        ),
        compiler_params=pltpu.CompilerParams(
            dimension_semantics=("parallel",),
        ),
    )(q3)

    # Lane-dense slab -> (B, T, 1); pure reshape/slice plumbing.
    return out.reshape(n_pad)[:N].reshape(B, T, 1)


if __name__ == "__main__":
    key = jax.random.PRNGKey(0)
    batch, seq, n_agents = 2, 8, 4  # small shapes consistent with the module
    agent_qs = jax.random.normal(key, (batch, seq, n_agents), dtype=jnp.float32)

    out = vdn_mixer_forward(agent_qs)
    out = jax.block_until_ready(out)

    # Reference check (same semantics as th.sum(dim=2, keepdim=True))
    ref = jnp.sum(agent_qs, axis=2, keepdims=True)
    assert out.shape == (batch, seq, 1), out.shape
    assert jnp.allclose(out, ref, atol=1e-6), "mismatch vs reference"

    print("KERNEL_OK")
</pallas_src>

<mosaic_0001>
module attributes {stable_mosaic.version = 11 : i64} {
  func.func @_vdn_sum_kernel(%arg0: i32, %arg1: memref<1x128x4xf32, #tpu.memory_space<vmem>>, %arg2: memref<1x128xf32, #tpu.memory_space<vmem>>) attributes {dimension_semantics = [#tpu.dimension_semantics<parallel>], iteration_bounds = array<i64: 1>, scalar_prefetch = 0 : i64, scratch_operands = 0 : i64, tpu.core_type = #tpu.core_type<tc>, window_params = [{transform_indices = @transform_0, window_bounds = array<i64: 1, 128, 4>}, {transform_indices = @transform_1, window_bounds = array<i64: 1, 128>}]} {
    %c0 = arith.constant 0 : index
    %c0_0 = arith.constant 0 : index
    %c0_1 = arith.constant 0 : index
    %0 = vector.load %arg1[%c0, %c0_0, %c0_1] : memref<1x128x4xf32, #tpu.memory_space<vmem>>, vector<1x128x4xf32>
    %cst = arith.constant dense<0.000000e+00> : vector<1x128xf32>
    %1 = vector.multi_reduction <add>, %0, %cst [2] : vector<1x128x4xf32> to vector<1x128xf32>
    %c0_2 = arith.constant 0 : index
    %c0_3 = arith.constant 0 : index
    %2 = vector.load %arg2[%c0_2, %c0_3] : memref<1x128xf32, #tpu.memory_space<vmem>>, vector<1x128xf32>
    tpu.vector_store %arg2[%c0_2, %c0_3], %1 {strides = array<i32>} : memref<1x128xf32, #tpu.memory_space<vmem>>, vector<1x128xf32>,
    return
  }
  func.func @transform_0(%arg0: i32) -> (i32, i32, i32) {
    %c0_i32 = arith.constant 0 : i32
    %c0_i32_0 = arith.constant 0 : i32
    %c0_i32_1 = arith.constant 0 : i32
    return %arg0, %c0_i32, %c0_i32_0 : i32, i32, i32
  }
  func.func @transform_1(%arg0: i32) -> (i32, i32) {
    %c0_i32 = arith.constant 0 : i32
    %c0_i32_0 = arith.constant 0 : i32
    return %arg0, %c0_i32 : i32, i32
  }
}

</mosaic_0001>

<bundles_post_ra>
// kernel: tpu_custom_call.1
= control target key start
LH: loop header
LB: loop body
LE: loop exit
PB: predicated region body
PF: predicated region fallthrough
CT: control target
= control target key end

     0   :  { %vm25_vm0 = vcmask 31744   ;;  %s365_s0 = inlined_call_operand.vmem [shape: f32[1,128,4], index: 0, kind: input, shape index: {}]   ;;  %s366_s1 = inlined_call_operand.hbm [shape: f32[1,128], index: 1, kind: output, shape index: {}]  }
   0x1   :  { %v9_v0 = vld [vmem:[%s365_s0] sm:$0xff]  ;;  %v11_v1 = vld [vmem:[%s365_s0 + $0x10] sm:$0xff]  ;;  %v10_v2 = vld [vmem:[%s365_s0 + $0x8] sm:$0xff] }
   0x2   :  { %v26_v3 = vsel %vm25_vm0, %v9_v0, 0.0  ;;  %v32_v4 = vsel %vm25_vm0, %v11_v1, 0.0  ;;  %v12_v5 = vld [vmem:[%s365_s0 + $0x18] sm:$0xff]  ;;  %v29_v6 = vsel %vm25_vm0, %v10_v2, 0.0  ;;  %v13_v8 = vld [vmem:[%s365_s0 + $0x20] sm:$0xff]  ;;  %v14_v9 = vld [vmem:[%s365_s0 + $0x28] sm:$0xff] }
   0x3   :  { %27 = vadd.xlane.f32.xlu0 %v26_v3  ;;  %33 = vadd.xlane.f32.xlu1 %v32_v4  ;;  %v35_v7 = vsel %vm25_vm0, %v12_v5, 0.0 }
   0x7   :  { %30 = vadd.xlane.f32.xlu0 %v29_v6  ;;  %36 = vadd.xlane.f32.xlu1 %v35_v7 }
   0x8   :  { %6 = vsyncpa [#allocation3], 0  ;;  %v38_v10 = vsel %vm25_vm0, %v13_v8, 0.0  ;;  %v41_v11 = vsel %vm25_vm0, %v14_v9, 0.0  ;;  %v15_v12 = vld [vmem:[%s365_s0 + $0x30] sm:$0xff]  ;;  %v16_v13 = vld [vmem:[%s365_s0 + $0x38] sm:$0xff]  ;;  %v90_v32 = vlaneseq }
   0x9   :  { %v44_v14 = vsel %vm25_vm0, %v15_v12, 0.0  ;;  %v47_v15 = vsel %vm25_vm0, %v16_v13, 0.0  ;;  %v17_v16 = vld [vmem:[%s365_s0 + $0x40] sm:$0xff]  ;;  %v18_v17 = vld [vmem:[%s365_s0 + $0x48] sm:$0xff]  ;;  %v19_v20 = vld [vmem:[%s365_s0 + $0x50] sm:$0xff]  ;;  %vm101_vm1 = vcmask 130112  }
   0xa   :  { %v50_v18 = vsel %vm25_vm0, %v17_v16, 0.0  ;;  %v53_v19 = vsel %vm25_vm0, %v18_v17, 0.0  ;;  %v20_v21 = vld [vmem:[%s365_s0 + $0x58] sm:$0xff]  ;;  %v56_v22 = vsel %vm25_vm0, %v19_v20, 0.0  ;;  %v21_v24 = vld [vmem:[%s365_s0 + $0x60] sm:$0xff]  ;;  %v22_v25 = vld [vmem:[%s365_s0 + $0x68] sm:$0xff] }
   0xb   :  { %39 = vadd.xlane.f32.xlu0 %v38_v10  ;;  %42 = vadd.xlane.f32.xlu1 %v41_v11  ;;  %v59_v23 = vsel %vm25_vm0, %v20_v21, 0.0  ;;  %v62_v26 = vsel %vm25_vm0, %v21_v24, 0.0  ;;  %v65_v27 = vsel %vm25_vm0, %v22_v25, 0.0  ;;  %v23_v28 = vld [vmem:[%s365_s0 + $0x70] sm:$0xff]  ;;  %v24_v29 = vld [vmem:[%s365_s0 + $0x78] sm:$0xff]  ;;  %v317_v33 = vand.u32 127, %v90_v32 }
   0xc   :  { %v68_v30 = vsel %vm25_vm0, %v23_v28, 0.0  ;;  %v71_v31 = vsel %vm25_vm0, %v24_v29, 0.0  ;;  %v319_v34 = vshrl.u32 %v90_v32, 7  ;;  %vm108_vm2 = vcmask 195712   ;;  %s242_s0 = smov [#allocation2]  }
   0xd   :  { %v96_v35 = vadd.s32 4294967288, %v317_v33  ;;  %v110_v36 = vadd.s32 4294967272, %v317_v33  ;;  %v103_v37 = vadd.s32 4294967280, %v317_v33  ;;  %v117_v40 = vadd.s32 4294967264, %v317_v33  ;;  %s209_s9 = sshll.u32 %s242_s0, 4  ;;  %s210_s9 = int_to_ptr.vmem [resolvable:$true] %s209_s9 }
   0xe   :  { %v94_v41 = vsub.s32 %v317_v33, %v319_v34  ;;  %v124_v45 = vadd.s32 4294967256, %v317_v33  ;;  %v131_v52 = vadd.s32 4294967248, %v317_v33  ;;  %vm115_vm3 = vcmask 261312   ;;  %s218_s10 = scalar_lea.vmem %s210_s9, 16  ;;  %s222_s11 = scalar_lea.vmem %s210_s9, 32 }
   0xf   :  { %45 = vadd.xlane.f32.xlu0 %v44_v14  ;;  %48 = vadd.xlane.f32.xlu1 %v47_v15  ;;  %v99_v42 = vsub.s32 %v96_v35, %v319_v34  ;;  %v113_v43 = vsub.s32 %v110_v36, %v319_v34  ;;  %v106_v44 = vsub.s32 %v103_v37, %v319_v34  ;;  %v138_v55 = vadd.s32 4294967240, %v317_v33  ;;  %p219_p0 = scmp.ne.s32.totalorder %s210_s9, %s218_s10  ;;  %p223_p1 = scmp.lt.s32.totalorder %s210_s9, %s210_s9 }
  0x10   :  { %v120_v48 = vsub.s32 %v117_v40, %v319_v34  ;;  %v127_v54 = vsub.s32 %v124_v45, %v319_v34  ;;  %vm122_vm4 = vcmask 326912   ;;  %v134_v62 = vsub.s32 %v131_v52, %v319_v34  ;;  %p224_p2 = scmp.lt.s32.totalorder %s222_s11, %s218_s10 }
  0x11   :  { %v145_v63 = vadd.s32 4294967232, %v317_v33  ;;  %v141_v1 = vsub.s32 %v138_v55, %v319_v34  ;;  %v152_v2 = vadd.s32 4294967224, %v317_v33  ;;  %vm129_vm5 = vcmask 392512  }
  0x12   :  { %vm136_vm6 = vcmask 458112   ;;  %v159_v8 = vadd.s32 4294967216, %v317_v33  ;;  %v166_v12 = vadd.s32 4294967208, %v317_v33  ;;  %vm143_vm7 = vcmask 523712   ;;  %p225_p3 = por %p224_p2, %p223_p1 }
  0x13   :  { %51 = vadd.xlane.f32.xlu0 %v50_v18  ;;  %54 = vadd.xlane.f32.xlu1 %v53_v19  ;;  %v148_v7 = vsub.s32 %v145_v63, %v319_v34  ;;  %v155_v11 = vsub.s32 %v152_v2, %v319_v34  ;;  %vm150_vm8 = vcmask 589312   ;;  %v173_v18 = vadd.s32 4294967200, %v317_v33 }
  0x14   :  { %v162_v17 = vsub.s32 %v159_v8, %v319_v34  ;;  %v169_v21 = vsub.s32 %v166_v12, %v319_v34  ;;  %vm157_vm9 = vcmask 654912   ;;  %vm164_vm10 = vcmask 720512   ;;  %p226_p4 = pnand %p225_p3, %p219_p0 }
  0x15   :  { %v187_v28 = vadd.s32 4294967184, %v317_v33  ;;  %v194_v29 = vadd.s32 4294967176, %v317_v33  ;;  %vm171_vm11 = vcmask 786112   ;;  %vm178_vm12 = vcmask 851712  }
  0x16   :  { %vm185_vm13 = vcmask 917312   ;;  %vm192_vm14 = vcmask 982912   ;;  %vm199_vm15 = vcmask 1048512  }
  0x17   :  { %57 = vadd.xlane.f32.xlu0 %v56_v22  ;;  %60 = vadd.xlane.f32.xlu1 %v59_v23  ;;  %v180_v22 = vadd.s32 4294967192, %v317_v33  ;;  %v197_v40 = vsub.s32 %v194_v29, %v319_v34 }
  0x19   :  { %v183_v32 = vsub.s32 %v180_v22, %v319_v34 }
  0x1b   :  { %63 = vadd.xlane.f32.xlu0 %v62_v26  ;;  %66 = vadd.xlane.f32.xlu1 %v65_v27  ;;  %v176_v27 = vsub.s32 %v173_v18, %v319_v34 }
  0x1f   :  { %69 = vadd.xlane.f32.xlu0 %v68_v30  ;;  %72 = vadd.xlane.f32.xlu1 %v71_v31 }
  0x90   :  { %v28_v38 = vpop.xlane.xlu0 %27  ;;  %v34_v39 = vpop.xlane.xlu1 %33 }
  0x91   :  { %v95_v49 = vrot.slane %v28_v38, %v94_v41  ;;  %v107_v53 = vrot.slane %v34_v39, %v106_v44  ;;  %v190_v39 = vsub.s32 %v187_v28, %v319_v34 }
  0x94   :  { %v31_v46 = vpop.xlane.xlu0 %30  ;;  %v37_v47 = vpop.xlane.xlu1 %36 }
  0x95   :  { %v100_v50 = vrot.slane %v31_v46, %v99_v42  ;;  %v114_v51 = vrot.slane %v37_v47, %v113_v43 }
  0x97   :  { %v102_v56 = vsel %vm101_vm1, %v100_v50, %v95_v49 }
  0x98   :  { %v109_v57 = vsel %vm108_vm2, %v107_v53, %v102_v56  ;;  %v40_v58 = vpop.xlane.xlu0 %39  ;;  %v43_v59 = vpop.xlane.xlu1 %42 }
  0x99   :  { %v116_v60 = vsel %vm115_vm3, %v114_v51, %v109_v57  ;;  %v121_v61 = vrot.slane %v40_v58, %v120_v48  ;;  %v128_v0 = vrot.slane %v43_v59, %v127_v54 }
  0x9b   :  { %v123_v3 = vsel %vm122_vm4, %v121_v61, %v116_v60 }
  0x9c   :  { %v46_v4 = vpop.xlane.xlu0 %45  ;;  %v49_v5 = vpop.xlane.xlu1 %48  ;;  %v130_v9 = vsel %vm129_vm5, %v128_v0, %v123_v3 }
  0x9d   :  { %v135_v6 = vrot.slane %v46_v4, %v134_v62  ;;  %v142_v10 = vrot.slane %v49_v5, %v141_v1 }
  0x9f   :  { %v137_v13 = vsel %vm136_vm6, %v135_v6, %v130_v9 }
  0xa0   :  { %v52_v14 = vpop.xlane.xlu0 %51  ;;  %v55_v15 = vpop.xlane.xlu1 %54  ;;  %v144_v19 = vsel %vm143_vm7, %v142_v10, %v137_v13 }
  0xa1   :  { %v149_v16 = vrot.slane %v52_v14, %v148_v7  ;;  %v156_v20 = vrot.slane %v55_v15, %v155_v11 }
  0xa3   :  { %v151_v23 = vsel %vm150_vm8, %v149_v16, %v144_v19 }
  0xa4   :  { %v58_v24 = vpop.xlane.xlu0 %57  ;;  %v61_v25 = vpop.xlane.xlu1 %60  ;;  %v158_v30 = vsel %vm157_vm9, %v156_v20, %v151_v23 }
  0xa5   :  { %v163_v26 = vrot.slane %v58_v24, %v162_v17  ;;  %v170_v31 = vrot.slane %v61_v25, %v169_v21 }
  0xa7   :  { %v165_v35 = vsel %vm164_vm10, %v163_v26, %v158_v30 }
  0xa8   :  { %v64_v36 = vpop.xlane.xlu0 %63  ;;  %v67_v37 = vpop.xlane.xlu1 %66  ;;  %v172_v41 = vsel %vm171_vm11, %v170_v31, %v165_v35 }
  0xa9   :  { %v177_v38 = vrot.slane %v64_v36, %v176_v27  ;;  %v184_v42 = vrot.slane %v67_v37, %v183_v32 }
  0xab   :  { %v179_v43 = vsel %vm178_vm12, %v177_v38, %v172_v41 }
  0xac   :  { %v70_v44 = vpop.xlane.xlu0 %69  ;;  %v73_v33 = vpop.xlane.xlu1 %72  ;;  %v186_v47 = vsel %vm185_vm13, %v184_v42, %v179_v43 }
  0xad   :  { %v191_v45 = vrot.slane %v70_v44, %v190_v39  ;;  %v198_v46 = vrot.slane %v73_v33, %v197_v40 }
  0xaf   :  { %v193_v48 = vsel %vm192_vm14, %v191_v45, %v186_v47 }
  0xb0   :  { %v200_v49 = vsel %vm199_vm15, %v198_v46, %v193_v48 }
  0xb1   :  { %202 = vst [vmem:[#allocation2] sm:$0x1] %v200_v49 }
  0xb2   :  { %229 = shalt.err (!%p226_p4)
}
  0xb3   :  { %s230_s14 = scalar_lea.hbm %s366_s1, 16 }
  0xb4   :  { %p231_p5 = scmp.ne.s32.totalorder %s366_s1, %s230_s14  ;;  %p234_p6 = scmp.lt.u32.totalorder %s230_s14, %s366_s1 }
  0xb6   :  { %p236_p7 = pnand %p234_p6, %p231_p5 }
  0xb8   :  { %239 = shalt.err (!%p236_p7)
}
  0xb9   :  { %212 = dma.vmem_to_hbm [thread:$0]  %s210_s9, 16, %s366_s1, [#allocation3]  }
  0xba   :  { %240 = dma.done.wait [#allocation3], 16  }
  0xbb   :  { %241 = vsyncadd [#allocation3], 4294967280 }
  0xbc   :  { %216 = vsyncpa [#allocation3], 1 }

</bundles_post_ra>
